<compile_context>
chip_gen: v6e
topology: v6e:2x2x1
jax: 0.10.0
libtpu: 0.0.40
codegen_flags: <defaults>
</compile_context>

<pallas_src>
import jax
import jax.numpy as jnp
from jax.experimental import pallas as pl
from jax.experimental.pallas import tpu as pltpu


def _adversary_kernel(adv_ref,    # (TB, D)  adversary input, native dtype (f32)
                      lab_ref,    # (TB, 1)  labels as an f32 column
                      w1l_ref,    # (1, H)   row of W1 multiplying the label column (f32)
                      w1r_ref,    # (D, H)   rest of W1 (compute dtype)
                      b1_ref,     # (1, H)   f32
                      w2_ref,     # (H, C)   compute dtype
                      b2_ref,     # (1, C)   f32
                      bpos_ref,   # (1, C)   f32 baseline logits (label == 1)
                      bneg_ref,   # (1, C)   f32 baseline logits (label == 0)
                      pred_ref,   # out: (TB, C)      baseline + prediction
                      hcat_ref):  # out: (TB, H + C)  [ h | baseline ]
    lab = lab_ref[...]                                   # (TB, 1) f32

    # input = cat(labels[:, None], adv_input); dropout (eval mode) is identity.
    # relu(input) @ W1 is split into:
    #   relu(label) * W1[0:1]  -> VPU broadcast multiply (K=1 stays off the MXU)
    # + relu(adv)   @ W1[1:]   -> MXU (operand cast to compute dtype HERE, not in
    #                             the wrapper, after the f32 ReLU)
    x_lab = jnp.maximum(lab, 0.0)                        # identity for {0,1} labels
    x_adv = jnp.maximum(adv_ref[...], 0.0)               # (TB, D) f32 ReLU on the VPU
    pre = (x_lab * w1l_ref[...]
           + jnp.dot(x_adv.astype(w1r_ref.dtype), w1r_ref[...],
                     preferred_element_type=jnp.float32)
           + b1_ref[...])
    h = jnp.maximum(pre, 0.0)                            # (TB, H) f32

    # prediction = linear(dropout(h)); dropout (eval mode) is identity.
    p = (jnp.dot(h.astype(w2_ref.dtype), w2_ref[...],
                 preferred_element_type=jnp.float32)
         + b2_ref[...])                                  # (TB, C) f32

    # Baseline-logit mix, fused in-kernel (all f32 to preserve reference numerics).
    baseline = bpos_ref[...] * lab + bneg_ref[...] * (1.0 - lab)   # (TB, C) f32

    H = h.shape[-1]
    pred_ref[...] = baseline + p                         # output 1: (TB, C)
    hcat_ref[:, :H] = h                                  # output 2: [h | baseline]
    hcat_ref[:, H:] = baseline                           # (two direct stores, no concat)


def _pick_batch_tile(B, block_b):
    """Sublane-aligned batch tile; >= 2 tiles whenever B >= 16 (two v7x TCs)."""
    if B < 16:
        return B                                  # single full-extent tile (any B)
    tb = min(block_b, B)
    tb = max(8, (tb // 8) * 8)                    # sublane-align
    if pl.cdiv(B, tb) < 2:                        # guarantee at least two tiles
        tb = ((pl.cdiv(B, 2) + 7) // 8) * 8
    return tb


def adversary_forward(adv_input, labels, W1, b1, W2, b2,
                      baseline_pred_pos, baseline_pred_neg,
                      *, compute_dtype=jnp.bfloat16, block_b=1024):
    """adv_input: (B, D), labels: (B,).
    W1: (D+1, H), b1: (H,), W2: (H, C), b2: (C,),
    baseline_pred_*: (C,) raw probabilities in (0, 1).
    Returns (baseline + prediction, concat(h, baseline)) with shapes (B, C), (B, H+C)."""
    B, D = adv_input.shape
    H = W1.shape[1]
    C = W2.shape[1]

    # Logit transform done at "__init__" time (tiny (C,) glue, plain JAX).
    bpos = jnp.log(1e-05 + baseline_pred_pos / (1.0 - baseline_pred_pos + 1e-05))
    bneg = jnp.log(1e-05 + baseline_pred_neg / (1.0 - baseline_pred_neg + 1e-05))
    bpos = bpos.reshape(1, C).astype(jnp.float32)
    bneg = bneg.reshape(1, C).astype(jnp.float32)

    # Small resident parameters: cast once in the wrapper (negligible traffic).
    w1l = W1[:1, :].astype(jnp.float32)                  # label column -> VPU path, f32
    w1r = W1[1:, :].astype(compute_dtype)                # MXU operand
    w2c = W2.astype(compute_dtype)                       # MXU operand
    b1r = b1.reshape(1, H).astype(jnp.float32)
    b2r = b2.reshape(1, C).astype(jnp.float32)
    lab2d = labels.reshape(B, 1).astype(jnp.float32)

    TB = _pick_batch_tile(B, block_b)
    grid = (pl.cdiv(B, TB),)                             # ragged tail handled by Pallas masking

    # Derive the scoped-VMEM limit from the actual (double-buffered) footprint.
    in_item = jnp.dtype(adv_input.dtype).itemsize
    c_item = jnp.dtype(compute_dtype).itemsize
    need = (2 * TB * (D * in_item + 4)                   # adv + label tiles (x2 buffers)
            + 2 * TB * (C + H + C) * 4                   # both outputs (x2 buffers)
            + 2 * (D * H * c_item + H * C * c_item       # resident weights
                   + (2 * H + 3 * C) * 4))               # w1l, b1, b2, bpos, bneg
    vmem_limit = int(min(96 << 20, max(16 << 20, 2 * need + (4 << 20))))

    cost = pl.CostEstimate(
        flops=2 * B * D * H + 2 * B * H * C,
        transcendentals=0,
        bytes_accessed=(B * D * in_item + B * 4          # adv + labels read
                        + B * C * 4 + B * (H + C) * 4    # both outputs written
                        + (D * H + H * C) * c_item       # weights
                        + (2 * H + 3 * C) * 4))

    const = lambda i: (0, 0)
    pred, hcat = pl.pallas_call(
        _adversary_kernel,
        out_shape=(jax.ShapeDtypeStruct((B, C), jnp.float32),
                   jax.ShapeDtypeStruct((B, H + C), jnp.float32)),
        grid=grid,
        in_specs=[
            pl.BlockSpec((TB, D), lambda i: (i, 0)),     # adv_input, tiled over batch
            pl.BlockSpec((TB, 1), lambda i: (i, 0)),     # labels, tiled over batch
            pl.BlockSpec((1, H), const),                 # W1 label row   (resident)
            pl.BlockSpec((D, H), const),                 # W1 rest        (resident)
            pl.BlockSpec((1, H), const),                 # b1             (resident)
            pl.BlockSpec((H, C), const),                 # W2             (resident)
            pl.BlockSpec((1, C), const),                 # b2             (resident)
            pl.BlockSpec((1, C), const),                 # baseline logits (pos)
            pl.BlockSpec((1, C), const),                 # baseline logits (neg)
        ],
        out_specs=(pl.BlockSpec((TB, C), lambda i: (i, 0)),
                   pl.BlockSpec((TB, H + C), lambda i: (i, 0))),
        compiler_params=pltpu.CompilerParams(
            dimension_semantics=("parallel",),           # shard batch tiles across TCs
            vmem_limit_bytes=vmem_limit,
        ),
        cost_estimate=cost,
    )(adv_input, lab2d, w1l, w1r, b1r, w2c, b2r, bpos, bneg)

    return pred, hcat


def _reference(adv_input, labels, W1, b1, W2, b2, bpos_raw, bneg_raw):
    """Pure-JAX f32 reference mirroring the PyTorch forward (eval-mode dropout)."""
    bpos = jnp.log(1e-05 + bpos_raw / (1.0 - bpos_raw + 1e-05))
    bneg = jnp.log(1e-05 + bneg_raw / (1.0 - bneg_raw + 1e-05))
    x = jnp.concatenate([labels[:, None], adv_input], axis=-1)
    h = jax.nn.relu(jax.nn.relu(x) @ W1 + b1)
    pred = h @ W2 + b2
    baseline = bpos[None, :] * labels[:, None] + bneg[None, :] * (1.0 - labels[:, None])
    return baseline + pred, jnp.concatenate([h, baseline], axis=-1)


if __name__ == "__main__":
    key = jax.random.PRNGKey(0)
    B, D, H, C = 8, 32, 32, 4   # batch, input_dim, adversary_hidden_dim, num_classes

    ks = jax.random.split(key, 8)
    adv_input = jax.random.normal(ks[0], (B, D), dtype=jnp.float32)
    labels = jax.random.bernoulli(ks[1], 0.5, (B,)).astype(jnp.float32)

    # Deterministic parameter init (shapes from __init__; (in, out) layout).
    W1 = (jax.random.normal(ks[2], (D + 1, H), dtype=jnp.float32)
          / jnp.sqrt(jnp.float32(D + 1)))
    b1 = jax.random.normal(ks[3], (H,), dtype=jnp.float32) * 0.01
    W2 = (jax.random.normal(ks[4], (H, C), dtype=jnp.float32)
          / jnp.sqrt(jnp.float32(H)))
    b2 = jax.random.normal(ks[5], (C,), dtype=jnp.float32) * 0.01
    baseline_pred_pos = jax.random.uniform(ks[6], (C,), minval=0.05, maxval=0.95)
    baseline_pred_neg = jax.random.uniform(ks[7], (C,), minval=0.05, maxval=0.95)

    pred_ref, h_ref = _reference(adv_input, labels, W1, b1, W2, b2,
                                 baseline_pred_pos, baseline_pred_neg)

    # Fast path: bf16 MXU operands (cast in-kernel), f32 accumulation / elementwise.
    pred, h_out = adversary_forward(adv_input, labels, W1, b1, W2, b2,
                                    baseline_pred_pos, baseline_pred_neg,
                                    compute_dtype=jnp.bfloat16)
    jax.block_until_ready((pred, h_out))
    assert pred.shape == (B, C) and h_out.shape == (B, H + C)
    assert jnp.allclose(pred, pred_ref, atol=5e-2, rtol=5e-2)
    assert jnp.allclose(h_out, h_ref, atol=5e-2, rtol=5e-2)

    # Exactness check: full f32 path must match the reference tightly.
    pred32, h32 = adversary_forward(adv_input, labels, W1, b1, W2, b2,
                                    baseline_pred_pos, baseline_pred_neg,
                                    compute_dtype=jnp.float32)
    jax.block_until_ready((pred32, h32))
    assert jnp.allclose(pred32, pred_ref, atol=1e-4, rtol=1e-4)
    assert jnp.allclose(h32, h_ref, atol=1e-4, rtol=1e-4)

    print("KERNEL_OK")
</pallas_src>

<mosaic_0001>
module attributes {stable_mosaic.version = 11 : i64} {
  func.func @_adversary_kernel(%arg0: i32, %arg1: memref<8x32xf32, #tpu.memory_space<vmem>>, %arg2: memref<8x1xf32, #tpu.memory_space<vmem>>, %arg3: memref<1x32xf32, #tpu.memory_space<vmem>>, %arg4: memref<32x32xbf16, #tpu.memory_space<vmem>>, %arg5: memref<1x32xf32, #tpu.memory_space<vmem>>, %arg6: memref<32x4xbf16, #tpu.memory_space<vmem>>, %arg7: memref<1x4xf32, #tpu.memory_space<vmem>>, %arg8: memref<1x4xf32, #tpu.memory_space<vmem>>, %arg9: memref<1x4xf32, #tpu.memory_space<vmem>>, %arg10: memref<8x4xf32, #tpu.memory_space<vmem>>, %arg11: memref<8x36xf32, #tpu.memory_space<vmem>>) attributes {dimension_semantics = [#tpu.dimension_semantics<parallel>], iteration_bounds = array<i64: 1>, scalar_prefetch = 0 : i64, scratch_operands = 0 : i64, tpu.core_type = #tpu.core_type<tc>, window_params = [{transform_indices = @transform_0, window_bounds = array<i64: 8, 32>}, {transform_indices = @transform_1, window_bounds = array<i64: 8, 1>}, {pipeline_mode = #tpu.pipeline_mode<synchronous>, transform_indices = @transform_2, window_bounds = array<i64: 1, 32>}, {pipeline_mode = #tpu.pipeline_mode<synchronous>, transform_indices = @transform_3, window_bounds = array<i64: 32, 32>}, {pipeline_mode = #tpu.pipeline_mode<synchronous>, transform_indices = @transform_4, window_bounds = array<i64: 1, 32>}, {pipeline_mode = #tpu.pipeline_mode<synchronous>, transform_indices = @transform_5, window_bounds = array<i64: 32, 4>}, {pipeline_mode = #tpu.pipeline_mode<synchronous>, transform_indices = @transform_6, window_bounds = array<i64: 1, 4>}, {pipeline_mode = #tpu.pipeline_mode<synchronous>, transform_indices = @transform_7, window_bounds = array<i64: 1, 4>}, {pipeline_mode = #tpu.pipeline_mode<synchronous>, transform_indices = @transform_8, window_bounds = array<i64: 1, 4>}, {transform_indices = @transform_9, window_bounds = array<i64: 8, 4>}, {transform_indices = @transform_10, window_bounds = array<i64: 8, 36>}]} {
    %c0 = arith.constant 0 : index
    %c0_0 = arith.constant 0 : index
    %0 = vector.load %arg2[%c0, %c0_0] : memref<8x1xf32, #tpu.memory_space<vmem>>, vector<8x1xf32>
    %cst = arith.constant 0.000000e+00 : f32
    %1 = vector.broadcast %cst : f32 to vector<8x1xf32>
    %2 = arith.maximumf %0, %1 : vector<8x1xf32>
    %c0_1 = arith.constant 0 : index
    %c0_2 = arith.constant 0 : index
    %3 = vector.load %arg1[%c0_1, %c0_2] : memref<8x32xf32, #tpu.memory_space<vmem>>, vector<8x32xf32>
    %cst_3 = arith.constant 0.000000e+00 : f32
    %4 = vector.broadcast %cst_3 : f32 to vector<8x32xf32>
    %5 = arith.maximumf %3, %4 : vector<8x32xf32>
    %c0_4 = arith.constant 0 : index
    %c0_5 = arith.constant 0 : index
    %6 = vector.load %arg3[%c0_4, %c0_5] : memref<1x32xf32, #tpu.memory_space<vmem>>, vector<1x32xf32>
    %7 = vector.broadcast %2 : vector<8x1xf32> to vector<8x32xf32>
    %8 = vector.broadcast %6 : vector<1x32xf32> to vector<8x32xf32>
    %9 = arith.mulf %7, %8 : vector<8x32xf32>
    %10 = arith.truncf %5 : vector<8x32xf32> to vector<8x32xbf16>
    %c0_6 = arith.constant 0 : index
    %c0_7 = arith.constant 0 : index
    %11 = vector.load %arg4[%c0_6, %c0_7] : memref<32x32xbf16, #tpu.memory_space<vmem>>, vector<32x32xbf16>
    %cst_8 = arith.constant dense<0.000000e+00> : vector<8x32xf32>
    %12 = tpu.matmul %10, %11, %cst_8 {dimension_numbers = #tpu.dot_dimension_numbers<[1], [0], [0], [1], [0, 0, 1, 1], [], []>} : vector<8x32xbf16>, vector<32x32xbf16>, vector<8x32xf32> -> vector<8x32xf32>
    %13 = arith.addf %9, %12 : vector<8x32xf32>
    %c0_9 = arith.constant 0 : index
    %c0_10 = arith.constant 0 : index
    %14 = vector.load %arg5[%c0_9, %c0_10] : memref<1x32xf32, #tpu.memory_space<vmem>>, vector<1x32xf32>
    %15 = vector.broadcast %14 : vector<1x32xf32> to vector<8x32xf32>
    %16 = arith.addf %13, %15 : vector<8x32xf32>
    %cst_11 = arith.constant 0.000000e+00 : f32
    %17 = vector.broadcast %cst_11 : f32 to vector<8x32xf32>
    %18 = arith.maximumf %16, %17 : vector<8x32xf32>
    %19 = arith.truncf %18 : vector<8x32xf32> to vector<8x32xbf16>
    %c0_12 = arith.constant 0 : index
    %c0_13 = arith.constant 0 : index
    %20 = vector.load %arg6[%c0_12, %c0_13] : memref<32x4xbf16, #tpu.memory_space<vmem>>, vector<32x4xbf16>
    %cst_14 = arith.constant dense<0.000000e+00> : vector<8x4xf32>
    %21 = tpu.matmul %19, %20, %cst_14 {dimension_numbers = #tpu.dot_dimension_numbers<[1], [0], [0], [1], [0, 0, 1, 1], [], []>} : vector<8x32xbf16>, vector<32x4xbf16>, vector<8x4xf32> -> vector<8x4xf32>
    %c0_15 = arith.constant 0 : index
    %c0_16 = arith.constant 0 : index
    %22 = vector.load %arg7[%c0_15, %c0_16] : memref<1x4xf32, #tpu.memory_space<vmem>>, vector<1x4xf32>
    %23 = vector.broadcast %22 : vector<1x4xf32> to vector<8x4xf32>
    %24 = arith.addf %21, %23 : vector<8x4xf32>
    %c0_17 = arith.constant 0 : index
    %c0_18 = arith.constant 0 : index
    %25 = vector.load %arg8[%c0_17, %c0_18] : memref<1x4xf32, #tpu.memory_space<vmem>>, vector<1x4xf32>
    %26 = vector.broadcast %25 : vector<1x4xf32> to vector<8x4xf32>
    %27 = vector.broadcast %0 : vector<8x1xf32> to vector<8x4xf32>
    %28 = arith.mulf %26, %27 : vector<8x4xf32>
    %c0_19 = arith.constant 0 : index
    %c0_20 = arith.constant 0 : index
    %29 = vector.load %arg9[%c0_19, %c0_20] : memref<1x4xf32, #tpu.memory_space<vmem>>, vector<1x4xf32>
    %cst_21 = arith.constant 1.000000e+00 : f32
    %30 = vector.broadcast %cst_21 : f32 to vector<8x1xf32>
    %31 = arith.subf %30, %0 : vector<8x1xf32>
    %32 = vector.broadcast %29 : vector<1x4xf32> to vector<8x4xf32>
    %33 = vector.broadcast %31 : vector<8x1xf32> to vector<8x4xf32>
    %34 = arith.mulf %32, %33 : vector<8x4xf32>
    %35 = arith.addf %28, %34 : vector<8x4xf32>
    %36 = arith.addf %35, %24 : vector<8x4xf32>
    %c0_22 = arith.constant 0 : index
    %c0_23 = arith.constant 0 : index
    %37 = vector.load %arg10[%c0_22, %c0_23] : memref<8x4xf32, #tpu.memory_space<vmem>>, vector<8x4xf32>
    tpu.vector_store %arg10[%c0_22, %c0_23], %36 {strides = array<i32>} : memref<8x4xf32, #tpu.memory_space<vmem>>, vector<8x4xf32>,
    %c0_24 = arith.constant 0 : index
    %c0_25 = arith.constant 0 : index
    %38 = vector.load %arg11[%c0_24, %c0_25] : memref<8x36xf32, #tpu.memory_space<vmem>>, vector<8x32xf32>
    tpu.vector_store %arg11[%c0_24, %c0_25], %18 {strides = array<i32>} : memref<8x36xf32, #tpu.memory_space<vmem>>, vector<8x32xf32>,
    %c0_26 = arith.constant 0 : index
    %c32 = arith.constant 32 : index
    %39 = vector.load %arg11[%c0_26, %c32] : memref<8x36xf32, #tpu.memory_space<vmem>>, vector<8x4xf32>
    tpu.vector_store %arg11[%c0_26, %c32], %35 {strides = array<i32>} : memref<8x36xf32, #tpu.memory_space<vmem>>, vector<8x4xf32>,
    return
  }
  func.func @transform_0(%arg0: i32) -> (i32, i32) {
    %c0_i32 = arith.constant 0 : i32
    %c0_i32_0 = arith.constant 0 : i32
    return %arg0, %c0_i32 : i32, i32
  }
  func.func @transform_1(%arg0: i32) -> (i32, i32) {
    %c0_i32 = arith.constant 0 : i32
    %c0_i32_0 = arith.constant 0 : i32
    return %arg0, %c0_i32 : i32, i32
  }
  func.func @transform_2(%arg0: i32) -> (i32, i32) {
    %c0_i32 = arith.constant 0 : i32
    %c0_i32_0 = arith.constant 0 : i32
    %c0_i32_1 = arith.constant 0 : i32
    return %c0_i32, %c0_i32_0 : i32, i32
  }
  func.func @transform_3(%arg0: i32) -> (i32, i32) {
    %c0_i32 = arith.constant 0 : i32
    %c0_i32_0 = arith.constant 0 : i32
    %c0_i32_1 = arith.constant 0 : i32
    return %c0_i32, %c0_i32_0 : i32, i32
  }
  func.func @transform_4(%arg0: i32) -> (i32, i32) {
    %c0_i32 = arith.constant 0 : i32
    %c0_i32_0 = arith.constant 0 : i32
    %c0_i32_1 = arith.constant 0 : i32
    return %c0_i32, %c0_i32_0 : i32, i32
  }
  func.func @transform_5(%arg0: i32) -> (i32, i32) {
    %c0_i32 = arith.constant 0 : i32
    %c0_i32_0 = arith.constant 0 : i32
    %c0_i32_1 = arith.constant 0 : i32
    return %c0_i32, %c0_i32_0 : i32, i32
  }
  func.func @transform_6(%arg0: i32) -> (i32, i32) {
    %c0_i32 = arith.constant 0 : i32
    %c0_i32_0 = arith.constant 0 : i32
    %c0_i32_1 = arith.constant 0 : i32
    return %c0_i32, %c0_i32_0 : i32, i32
  }
  func.func @transform_7(%arg0: i32) -> (i32, i32) {
    %c0_i32 = arith.constant 0 : i32
    %c0_i32_0 = arith.constant 0 : i32
    %c0_i32_1 = arith.constant 0 : i32
    return %c0_i32, %c0_i32_0 : i32, i32
  }
  func.func @transform_8(%arg0: i32) -> (i32, i32) {
    %c0_i32 = arith.constant 0 : i32
    %c0_i32_0 = arith.constant 0 : i32
    %c0_i32_1 = arith.constant 0 : i32
    return %c0_i32, %c0_i32_0 : i32, i32
  }
  func.func @transform_9(%arg0: i32) -> (i32, i32) {
    %c0_i32 = arith.constant 0 : i32
    %c0_i32_0 = arith.constant 0 : i32
    return %arg0, %c0_i32 : i32, i32
  }
  func.func @transform_10(%arg0: i32) -> (i32, i32) {
    %c0_i32 = arith.constant 0 : i32
    %c0_i32_0 = arith.constant 0 : i32
    return %arg0, %c0_i32 : i32, i32
  }
}

</mosaic_0001>

<bundles_post_ra>
// kernel: tpu_custom_call.1
= control target key start
LH: loop header
LB: loop body
LE: loop exit
PB: predicated region body
PF: predicated region fallthrough
CT: control target
= control target key end

     0   :  { %v313_v1 = vmov 0.0   ;;  %vm314_vm0 = vmmov 0   ;;  %v315_v6 = vmov 0   ;;  %s415_s0 = inlined_call_operand.vmem [shape: f32[8,32], index: 0, kind: input, shape index: {}]   ;;  %s416_s1 = inlined_call_operand.vmem [shape: f32[8,1], index: 1, kind: input, shape index: {}]   ;;  %s417_s2 = inlined_call_operand.vmem [shape: f32[1,32], index: 2, kind: input, shape index: {}]   ;;  %s418_s3 = inlined_call_operand.vmem [shape: bf16[32,32], index: 3, kind: input, shape index: {}]   ;;  %s419_s4 = inlined_call_operand.vmem [shape: f32[1,32], index: 4, kind: input, shape index: {}]   ;;  %s420_s5 = inlined_call_operand.vmem [shape: bf16[32,4], index: 5, kind: input, shape index: {}]   ;;  %s421_s6 = inlined_call_operand.vmem [shape: f32[1,4], index: 6, kind: input, shape index: {}]   ;;  %s422_s7 = inlined_call_operand.vmem [shape: f32[1,4], index: 7, kind: input, shape index: {}]   ;;  %s423_s8 = inlined_call_operand.vmem [shape: f32[1,4], index: 8, kind: input, shape index: {}]   ;;  %s424_s9 = inlined_call_operand.vmem [shape: f32[8,4], index: 9, kind: output, shape index: {0}]   ;;  %s425_s10 = inlined_call_operand.hbm [shape: f32[8,36], index: 10, kind: output, shape index: {1}]  }
   0x1   :  { %v287_v0 = vld [vmem:[%s418_s3 + $0x8] sm:$0xff]   ;;  %264 = vmatprep.subr.bf16.mxu0 %v313_v1  ;;  %272 = vmatprep.subr.bf16.mxu1 %v313_v1  ;;  %v288_v2 = vld [vmem:[%s418_s3] sm:$0xff]  }
   0x2   :  { %265 = vmatpush3.bf16.msra.mxu0 %v287_v0  ;;  %268 = vmatprep.mubr.msk.bf16.mxu0 %vm314_vm0, %v313_v1  ;;  %v38_v3 = vld [vmem:[%s415_s0] sm:$0xff] }
   0x3   :  { %v36_v4 = vld [vmem:[%s416_s1] sm:$0xff]  ;;  %266 = vmatprep.subr.bf16.mxu0 %v313_v1  ;;  %v39_v5 = vmax.f32 %v38_v3, 0.0  ;;  %285 = vset.pattern.permute.xlu0 %v315_v6 }
   0x4   :  { %v37_v7 = vmax.f32 %v36_v4, 0.0  ;;  %v205_v8 = vsub.f32 1.0, %v36_v4  ;;  %286 = vset.pattern.permute.xlu1 %v315_v6  ;;  %276 = vmatprep.mubr.msk.bf16.mxu1 %vm314_vm0, %v313_v1 }
   0x5   :  { %v53_v9 = vpack.c.bf16 %v39_v5, %v39_v5 }
   0x6   :  { %43 = vperm.xlu0 %285, %v37_v7   ;;  %214 = vperm.xlu1 %286, %v205_v8  }
   0x7   :  { %16 = vsyncpa [#allocation3], 0  ;;  %267 = vmatpush3.bf16.msra.mxu0 %v288_v2  ;;  %vm70_vm1 = vcmask 261120   ;;  %v289_v10 = vld [vmem:[%s420_s5 + $0x8] sm:$0xff]   ;;  %v290_v11 = vld [vmem:[%s420_s5] sm:$0xff]   ;;  %s316_s26 = smov 32  }
   0x8   :  { %273 = vmatpush3.bf16.msra.mxu1 %v289_v10  ;;  %v257_v13 = vld [vmem:[%s423_s8] ss:$0 sm:$0xff]  ;;  %vm227_vm2 = vcmask 294144  }
   0x9   :  { %274 = vmatprep.subr.bf16.mxu1 %v313_v1  ;;  %v256_v15 = vld [vmem:[%s422_s7] ss:$0 sm:$0xff] }
   0xa   :  { %269 = vmatmul.mubr.msk.bf16.vlgmr.msra.gmra.mxu0 %vm70_vm1, %v53_v9  ;;  %200 = vperm.xlu0 %285, %v36_v4   ;;  %v247_v20 = vld [vmem:[%s417_s2] ss:$0 sm:$0xff]  ;;  %s317_s2 = smov [#allocation2]  }
   0xb   :  { %v251_v23 = vld [vmem:[%s419_s4] ss:$0 sm:$0xff]  ;;  %s237_s7 = sshll.u32 %s317_s2, 4  ;;  %s238_s7 = int_to_ptr.vmem [resolvable:$true] %s237_s7 }
   0xc   :  { %275 = vmatpush3.bf16.msra.mxu1 %v290_v11  ;;  %s291_s8 = scalar_lea.vmem %s238_s7, 128  ;;  %p296_p1 = scmp.lt.s32.totalorder %s238_s7, %s238_s7 }
   0xd   :  { %p292_p0 = scmp.ne.s32.totalorder %s238_s7, %s291_s8  ;;  %p297_p2 = scmp.lt.s32.totalorder %s291_s8, %s291_s8 }
   0xf   :  { %p298_p3 = por %p297_p2, %p296_p1 }
  0x11   :  { %p299_p4 = pnand %p298_p3, %p292_p0 }
  0x81   :  { %v44_v12 = vpop.permute.xlu0 %43  ;;  %v215_v14 = vpop.permute.xlu1 %214 }
  0x82   :  { %v217_v16 = vmul.f32 %v257_v13, %v215_v14  ;;  %v52_v21 = vmul.f32 %v247_v20, %v44_v12 }
  0x85   :  { %v201_v17 = vpop.permute.xlu0 %200 }
  0x86   :  { %v203_v18 = vmul.f32 %v256_v15, %v201_v17 }
  0x88   :  { %v218_v19 = vadd.f32 %v217_v16, %v203_v18 }
  0x8a   :  { %224 = vrot.lane.b32.xlu1 %v218_v19, %s316_s26 }
  0xca   :  { %v108_v22 = vpop.f32.mrf.mxu0 }
  0xcb   :  { %v114_v24 = vadd.f32 %v108_v22, %v52_v21 }
  0xcc   :  { %v270_v25 = vpop.f32.mrf.mxu0 }
  0xcd   :  { %v122_v26 = vadd.f32 %v251_v23, %v114_v24 }
  0xce   :  { %v111_v27 = vpop.f32.mrf.mxu0 }
  0xcf   :  { %v123_v28 = vmax.f32 %v122_v26, 0.0 }
  0xd0   :  { %v271_v29 = vpop.f32.mrf.mxu0 }
  0xd1   :  { %v124_v30 = vpack.c.bf16 %v123_v28, %v123_v28  ;;  %222 = vst.msk [vmem:[#allocation2] sm:$0xff] %vm70_vm1, %v123_v28 }
  0xd3   :  { %277 = vmatmul.mubr.msk.bf16.vlgmr.msra.gmra.mxu1 %vm70_vm1, %v124_v30 }
  0xfc   :  { %v225_v31 = vpop.permute.xlu1 %224 }
  0xfd   :  { %228 = vst.msk [vmem:[#allocation2] sm:$0xff] %vm227_vm2, %v225_v31 }
  0xfe   :  { %302 = shalt.err (!%p299_p4)
}
  0xff   :  { %240 = dma.vmem_to_hbm [thread:$0]  %s238_s7, 128, %s425_s10, [#allocation3]   ;;  %v252_v32 = vld [vmem:[%s421_s6] ss:$0 sm:$0xff]  ;;  %vm220_vm3 = vcmask 31744  }
 0x193   :  { %v185_v33 = vpop.f32.mrf.mxu1 }
 0x194   :  { %v186_v34 = vadd.f32 %v252_v32, %v185_v33 }
 0x195   :  { %v278_v35 = vpop.f32.mrf.mxu1 }
 0x196   :  { %v219_v36 = vadd.f32 %v218_v19, %v186_v34 }
 0x197   :  { %v188_v37 = vpop.f32.mrf.mxu1 }
 0x198   :  { %221 = vst.msk [vmem:[%s424_s9] sm:$0xff] %vm220_vm3, %v219_v36 }
 0x199   :  { %v279_v38 = vpop.f32.mrf.mxu1 }
 0x19a   :  { %311 = dma.done.wait [#allocation3], 128  }
 0x19b   :  { %312 = vsyncadd [#allocation3], 4294967168 }
 0x19c   :  { %246 = vsyncpa [#allocation3], 1 }

</bundles_post_ra>
